<compile_context>
chip_gen: v7x
topology: tpu7x:2x2x1
jax: 0.10.0
libtpu: 0.0.40
codegen_flags: <defaults>
</compile_context>

<pallas_src>
import functools

import jax
import jax.numpy as jnp
from jax.experimental import pallas as pl
from jax.experimental.pallas import tpu as pltpu


def _round_up(x, m):
    return (x + m - 1) // m * m


def _pool_loss_kernel(probs_ref, sel_ref, out_ref, *, fold, tile_rows,
                      chunk_rows, n_packed, tiles_per_split):
    s = pl.program_id(0)          # core split (parallel)
    t = pl.program_id(1)          # tile within split (arbitrary / reduction)

    @pl.when(t == 0)
    def _():
        out_ref[...] = jnp.zeros_like(out_ref)

    width = probs_ref.shape[1]
    tile_idx = s * tiles_per_split + t            # un-clamped logical tile
    base_row = tile_idx * tile_rows               # packed-row offset of tile

    # Hoisted iotas (JAX does not CSE broadcast_in_dim across loop iterations).
    col = jax.lax.broadcasted_iota(jnp.int32, (chunk_rows, width), 1)
    sub = jax.lax.broadcasted_iota(jnp.int32, (chunk_rows, 1), 0)

    def chunk_body(j, carry):
        r0 = pl.multiple_of(j * chunk_rows, chunk_rows)
        p = probs_ref[pl.ds(r0, chunk_rows), :]          # (chunk, width) native dtype
        sel = sel_ref[pl.ds(r0, chunk_rows), :]          # (chunk, fold)  int32

        # One-hot mask: lane l selected iff l == sel[r, g] for some group g.
        # Each compare is a cheap (chunk,1) lane-broadcast; padded rows carry
        # sel == -1 and never match.
        mask = col == sel[:, 0:1]
        for g in range(1, fold):
            mask = jnp.logical_or(mask, col == sel[:, g:g + 1])

        # Rows beyond the real array (partial / clamped tiles) contribute 0.
        valid = (sub + (base_row + r0)) < n_packed       # (chunk, 1) bool
        mask = jnp.logical_and(mask, valid)

        # Fill non-selected positions with 1.0 (log -> 0), then a lane-dense
        # full-tile log + reduce; select stays in the native dtype, only the
        # log input is cast to f32.
        chosen = jnp.where(mask, p, jnp.ones_like(p))
        logv = jnp.log(chosen.astype(jnp.float32))
        part = jnp.sum(jnp.sum(logv, axis=1, keepdims=True),
                       axis=0, keepdims=True)            # (1, 1)
        out_ref[...] += -part
        return carry

    jax.lax.fori_loop(0, tile_rows // chunk_rows, chunk_body, 0)


def pool_loss(probs, target, link_loss, ent_loss,
              link_weight=1.0, ent_weight=1.0,
              *, max_rows_per_tile=None,
              vmem_input_budget=40 * 1024 * 1024):
    """probs: (N, C) class probabilities (f32 or bf16); target: (N,) int class
    indices; link_loss / ent_loss: scalars."""
    n, c = probs.shape

    # Lane packing factor: fold rows per 128-lane row when C divides 128.
    fold = 128 // c if (c <= 128 and 128 % c == 0) else 1
    width = fold * c

    itemsize = probs.dtype.itemsize
    row_mult = {1: 32, 2: 16}.get(itemsize, 8)           # sublane multiple

    # Per-original-row selected lane inside its packed row; -1 never matches.
    sel = (jnp.arange(n, dtype=jnp.int32) % fold) * c + target.astype(jnp.int32)
    n_pad = _round_up(n, fold)
    if n_pad > n:
        sel = jnp.pad(sel, (0, n_pad - n), constant_values=-1)
        probs = jnp.pad(probs, ((0, n_pad - n), (0, 0)), constant_values=1)
    n_packed = n_pad // fold
    probs_packed = probs.reshape(n_packed, width)         # free reshape
    sel_packed = sel.reshape(n_packed, fold)

    # --- VMEM-accurate tile sizing (lanes pad to 128, inputs double-buffered).
    probs_row_vmem = _round_up(width, 128) * itemsize
    sel_row_vmem = 128 * 4
    per_row = probs_row_vmem + sel_row_vmem
    max_tn = max(row_mult,
                 (vmem_input_budget // (2 * per_row)) // row_mult * row_mult)

    tn_full = _round_up(n_packed, row_mult)
    tn = min(tn_full, max_tn)
    if tn_full >= 2 * row_mult:
        # Leave >= 2 tiles so v7x can shard the row axis across its 2 TCs.
        tn = min(tn, _round_up(pl.cdiv(n_packed, 2), row_mult))
    if max_rows_per_tile is not None:
        tn = min(tn, max(row_mult, max_rows_per_tile // row_mult * row_mult))

    # Tile = whole number of compute chunks (bounds elementwise intermediates).
    chunk = min(tn, 512)
    tn = (tn // chunk) * chunk

    num_tiles = pl.cdiv(n_packed, tn)
    num_splits = 2 if num_tiles >= 2 else 1
    tiles_per_split = pl.cdiv(num_tiles, num_splits)
    grid = (num_splits, tiles_per_split)

    def data_map(s, t):
        # Clamp over-extended logical tiles (odd tile counts); their rows are
        # masked out in-kernel so they contribute 0.
        return (jnp.minimum(s * tiles_per_split + t, num_tiles - 1), 0)

    kernel = functools.partial(
        _pool_loss_kernel, fold=fold, tile_rows=tn, chunk_rows=chunk,
        n_packed=n_packed, tiles_per_split=tiles_per_split)

    partials = pl.pallas_call(
        kernel,
        out_shape=jax.ShapeDtypeStruct((num_splits, 1), jnp.float32),
        grid=grid,
        in_specs=[
            pl.BlockSpec((tn, width), data_map),
            pl.BlockSpec((tn, fold), data_map),
        ],
        out_specs=pl.BlockSpec((1, 1), lambda s, t: (s, 0)),
        compiler_params=pltpu.CompilerParams(
            dimension_semantics=("parallel", "arbitrary"),
            vmem_limit_bytes=48 * 1024 * 1024),
    )(probs_packed, sel_packed)

    nll = jnp.sum(partials) / jnp.float32(n)
    return (nll
            + jnp.float32(link_weight) * jnp.asarray(link_loss, jnp.float32)
            + jnp.float32(ent_weight) * jnp.asarray(ent_loss, jnp.float32))


def pool_loss_ref(probs, target, link_loss, ent_loss,
                  link_weight=1.0, ent_weight=1.0):
    logp = jnp.log(probs.astype(jnp.float32))
    nll = -jnp.mean(logp[jnp.arange(probs.shape[0]), target])
    return nll + link_weight * link_loss + ent_weight * ent_loss


if __name__ == "__main__":
    key = jax.random.PRNGKey(0)
    k1, k2, k3, k4 = jax.random.split(key, 4)

    # Case 1: small batch, single tile, lane-packed (fold=4) path.
    N, C = 8, 32
    logits = jax.random.normal(k1, (N, C), dtype=jnp.float32)
    probs = jax.nn.softmax(logits, axis=-1)
    target = jax.random.randint(k2, (N,), 0, C, dtype=jnp.int32)
    link_loss = jax.random.uniform(k3, (), dtype=jnp.float32)
    ent_loss = jax.random.uniform(k4, (), dtype=jnp.float32)

    out = pool_loss(probs, target, link_loss, ent_loss, 1.0, 1.0)
    out = jax.block_until_ready(out)
    ref = pool_loss_ref(probs, target, link_loss, ent_loss, 1.0, 1.0)
    assert jnp.allclose(out, ref, rtol=1e-5, atol=1e-4), (out, ref)

    # Case 2: N not a multiple of fold, multi-tile, 2-way core split with a
    # clamped (masked-out) trailing logical tile, non-default weights.
    N2 = 135
    logits2 = jax.random.normal(k1, (N2, C), dtype=jnp.float32)
    probs2 = jax.nn.softmax(logits2, axis=-1)
    target2 = jax.random.randint(k2, (N2,), 0, C, dtype=jnp.int32)
    out2 = pool_loss(probs2, target2, link_loss, ent_loss, 0.5, 2.0,
                     max_rows_per_tile=8)      # forces 5 tiles -> grid (2, 3)
    out2 = jax.block_until_ready(out2)
    ref2 = pool_loss_ref(probs2, target2, link_loss, ent_loss, 0.5, 2.0)
    assert jnp.allclose(out2, ref2, rtol=1e-5, atol=1e-4), (out2, ref2)

    # Case 3: bf16 probabilities (native-dtype select, 16-row sublane multiple).
    N3 = 64
    logits3 = jax.random.normal(k3, (N3, C), dtype=jnp.float32)
    probs3 = jax.nn.softmax(logits3, axis=-1).astype(jnp.bfloat16)
    target3 = jax.random.randint(k4, (N3,), 0, C, dtype=jnp.int32)
    out3 = pool_loss(probs3, target3, link_loss, ent_loss, 1.0, 1.0)
    out3 = jax.block_until_ready(out3)
    ref3 = pool_loss_ref(probs3, target3, link_loss, ent_loss, 1.0, 1.0)
    assert jnp.allclose(out3, ref3, rtol=1e-5, atol=1e-4), (out3, ref3)

    print("KERNEL_OK")
</pallas_src>

<mosaic_0001>
module attributes {stable_mosaic.version = 11 : i64} {
  func.func @_pool_loss_kernel(%arg0: i32, %arg1: i32, %arg2: memref<8x128xf32, #tpu.memory_space<vmem>>, %arg3: memref<8x4xi32, #tpu.memory_space<vmem>>, %arg4: memref<1x1xf32, #tpu.memory_space<vmem>>) attributes {dimension_semantics = [#tpu.dimension_semantics<parallel>, #tpu.dimension_semantics<arbitrary>], iteration_bounds = array<i64: 1, 1>, scalar_prefetch = 0 : i64, scratch_operands = 0 : i64, tpu.core_type = #tpu.core_type<tc>, window_params = [{transform_indices = @transform_0, window_bounds = array<i64: 8, 128>}, {transform_indices = @transform_1, window_bounds = array<i64: 8, 4>}, {transform_indices = @transform_2, window_bounds = array<i64: 1, 1>}]} {
    %c0_i32 = arith.constant 0 : i32
    %0 = arith.cmpi eq, %arg1, %c0_i32 : i32
    %1 = arith.extui %0 : i1 to i32
    %c0_i32_0 = arith.constant 0 : i32
    %2 = arith.cmpi ne, %1, %c0_i32_0 : i32
    scf.if %2 {
      %cst_12 = arith.constant 0.000000e+00 : f32
      %48 = vector.broadcast %cst_12 : f32 to vector<1x1xf32>
      %c0_13 = arith.constant 0 : index
      %c0_14 = arith.constant 0 : index
      %49 = vector.load %arg4[%c0_13, %c0_14] : memref<1x1xf32, #tpu.memory_space<vmem>>, vector<1x1xf32>
      tpu.vector_store %arg4[%c0_13, %c0_14], %48 {strides = array<i32>} : memref<1x1xf32, #tpu.memory_space<vmem>>, vector<1x1xf32>,
    } else {
    }
    %c1_i32 = arith.constant 1 : i32
    %3 = arith.muli %arg0, %c1_i32 : i32
    %4 = arith.addi %3, %arg1 : i32
    %c8_i32 = arith.constant 8 : i32
    %5 = arith.muli %4, %c8_i32 : i32
    %6 = tpu.iota {dimensions = array<i32: 1>} : vector<8x128xi32>
    %7 = tpu.iota {dimensions = array<i32: 0>} : vector<8x1xi32>
    %c0_i32_1 = arith.constant 0 : i32
    %c8_i32_2 = arith.constant 8 : i32
    %8 = arith.muli %c0_i32_1, %c8_i32_2 : i32
    %9 = tpu.assume_multiple %8, 8 : i32
    %10 = arith.index_cast %9 : i32 to index
    %c0 = arith.constant 0 : index
    %11 = vector.load %arg2[%10, %c0] : memref<8x128xf32, #tpu.memory_space<vmem>>, vector<8x128xf32>
    %12 = arith.index_cast %9 : i32 to index
    %c0_3 = arith.constant 0 : index
    %13 = vector.load %arg3[%12, %c0_3] : memref<8x4xi32, #tpu.memory_space<vmem>>, vector<8x4xi32>
    %14 = vector.extract_strided_slice %13 {offsets = [0, 0], sizes = [8, 1], strides = [1, 1]} : vector<8x4xi32> to vector<8x1xi32>
    %15 = vector.broadcast %14 : vector<8x1xi32> to vector<8x128xi32>
    %16 = arith.cmpi eq, %6, %15 : vector<8x128xi32>
    %17 = vector.extract_strided_slice %13 {offsets = [0, 1], sizes = [8, 1], strides = [1, 1]} : vector<8x4xi32> to vector<8x1xi32>
    %18 = vector.broadcast %17 : vector<8x1xi32> to vector<8x128xi32>
    %19 = arith.cmpi eq, %6, %18 : vector<8x128xi32>
    %20 = arith.ori %16, %19 : vector<8x128xi1>
    %21 = vector.extract_strided_slice %13 {offsets = [0, 2], sizes = [8, 1], strides = [1, 1]} : vector<8x4xi32> to vector<8x1xi32>
    %22 = vector.broadcast %21 : vector<8x1xi32> to vector<8x128xi32>
    %23 = arith.cmpi eq, %6, %22 : vector<8x128xi32>
    %24 = arith.ori %20, %23 : vector<8x128xi1>
    %25 = vector.extract_strided_slice %13 {offsets = [0, 3], sizes = [8, 1], strides = [1, 1]} : vector<8x4xi32> to vector<8x1xi32>
    %26 = vector.broadcast %25 : vector<8x1xi32> to vector<8x128xi32>
    %27 = arith.cmpi eq, %6, %26 : vector<8x128xi32>
    %28 = arith.ori %24, %27 : vector<8x128xi1>
    %29 = arith.addi %5, %9 : i32
    %30 = vector.broadcast %29 : i32 to vector<8x1xi32>
    %31 = arith.addi %7, %30 : vector<8x1xi32>
    %c2_i32 = arith.constant 2 : i32
    %32 = vector.broadcast %c2_i32 : i32 to vector<8x1xi32>
    %33 = arith.cmpi slt, %31, %32 : vector<8x1xi32>
    %34 = vector.broadcast %33 : vector<8x1xi1> to vector<8x128xi1>
    %35 = arith.andi %28, %34 : vector<8x128xi1>
    %cst = arith.constant 1.000000e+00 : f32
    %36 = vector.broadcast %cst : f32 to vector<8x128xf32>
    %37 = arith.select %35, %11, %36 : vector<8x128xi1>, vector<8x128xf32>
    %38 = math.log %37 : vector<8x128xf32>
    %cst_4 = arith.constant dense<0.000000e+00> : vector<8xf32>
    %39 = vector.multi_reduction <add>, %38, %cst_4 [1] : vector<8x128xf32> to vector<8xf32>
    %40 = vector.shape_cast %39 : vector<8xf32> to vector<8x1xf32>
    %cst_5 = arith.constant dense<0.000000e+00> : vector<1xf32>
    %41 = vector.multi_reduction <add>, %40, %cst_5 [0] : vector<8x1xf32> to vector<1xf32>
    %42 = vector.shape_cast %41 : vector<1xf32> to vector<1x1xf32>
    %c0_6 = arith.constant 0 : index
    %c0_7 = arith.constant 0 : index
    %43 = vector.load %arg4[%c0_6, %c0_7] : memref<1x1xf32, #tpu.memory_space<vmem>>, vector<1x1xf32>
    %cst_8 = arith.constant 0.000000e+00 : f32
    %44 = vector.broadcast %cst_8 : f32 to vector<1x1xf32>
    %45 = arith.subf %44, %42 : vector<1x1xf32>
    %46 = arith.addf %43, %45 : vector<1x1xf32>
    %c0_9 = arith.constant 0 : index
    %c0_10 = arith.constant 0 : index
    %47 = vector.load %arg4[%c0_9, %c0_10] : memref<1x1xf32, #tpu.memory_space<vmem>>, vector<1x1xf32>
    tpu.vector_store %arg4[%c0_9, %c0_10], %46 {strides = array<i32>} : memref<1x1xf32, #tpu.memory_space<vmem>>, vector<1x1xf32>,
    %c1_i32_11 = arith.constant 1 : i32
    return
  }
  func.func @transform_0(%arg0: i32, %arg1: i32) -> (i32, i32) {
    %c1_i32 = arith.constant 1 : i32
    %0 = arith.muli %arg0, %c1_i32 : i32
    %1 = arith.addi %0, %arg1 : i32
    %c0_i32 = arith.constant 0 : i32
    %2 = arith.minsi %1, %c0_i32 : i32
    %c0_i32_0 = arith.constant 0 : i32
    %c0_i32_1 = arith.constant 0 : i32
    return %2, %c0_i32_0 : i32, i32
  }
  func.func @transform_1(%arg0: i32, %arg1: i32) -> (i32, i32) {
    %c1_i32 = arith.constant 1 : i32
    %0 = arith.muli %arg0, %c1_i32 : i32
    %1 = arith.addi %0, %arg1 : i32
    %c0_i32 = arith.constant 0 : i32
    %2 = arith.minsi %1, %c0_i32 : i32
    %c0_i32_0 = arith.constant 0 : i32
    %c0_i32_1 = arith.constant 0 : i32
    return %2, %c0_i32_0 : i32, i32
  }
  func.func @transform_2(%arg0: i32, %arg1: i32) -> (i32, i32) {
    %c0_i32 = arith.constant 0 : i32
    %c0_i32_0 = arith.constant 0 : i32
    return %arg0, %c0_i32 : i32, i32
  }
}

</mosaic_0001>

<bundles_post_ra>
// kernel: tpu_custom_call.1
= control target key start
LH: loop header
LB: loop body
LE: loop exit
PB: predicated region body
PF: predicated region fallthrough
CT: control target
= control target key end

     0   :  { %7 = vsyncpa [#allocation3], 0  ;;  %s280_s0 = inlined_call_operand.hbm [shape: f32[2,128], index: 0, kind: input, shape index: {}]   ;;  %s281_s1 = inlined_call_operand.vmem [shape: s32[2,4], index: 1, kind: input, shape index: {}]   ;;  %s282_s2 = inlined_call_operand.hbm [shape: f32[1,1], index: 2, kind: output, shape index: {}]  }
   0x1   :  { %8 = vsyncpa [#allocation4], 0 }
   0x2   :  { %19 = vsyncadd [#allocation3], 96  ;;  %s227_s9 = smov [#allocation2]   ;;  %s179_s13 = scalar_lea.hbm %s280_s0, 32 }
   0x3   :  { %s24_s10 = sshll.u32 %s227_s9, 4  ;;  %p180_p0 = scmp.ne.s32.totalorder %s280_s0, %s179_s13  ;;  %s25_s10 = int_to_ptr.vmem [resolvable:$true] %s24_s10 }
   0x4   :  { %p183_p1 = scmp.lt.u32.totalorder %s179_s13, %s280_s0 }
   0x6   :  { %p185_p2 = pnand %p183_p1, %p180_p0 }
   0x8   :  { %188 = shalt.err (!%p185_p2)
}
   0x9   :  { %s189_s18 = scalar_lea.vmem %s25_s10, 32  ;;  %s193_s19 = scalar_lea.vmem %s25_s10, 128 }
   0xa   :  { %p190_p3 = scmp.ne.s32.totalorder %s25_s10, %s189_s18  ;;  %p194_p4 = scmp.lt.s32.totalorder %s25_s10, %s25_s10 }
   0xb   :  { %p195_p5 = scmp.lt.s32.totalorder %s193_s19, %s189_s18 }
   0xd   :  { %p196_p6 = por %p195_p5, %p194_p4 }
   0xf   :  { %p197_p7 = pnand %p196_p6, %p190_p3 }
  0x11   :  { %200 = shalt.err (!%p197_p7)
}
  0x12   :  { %s228_s20 = smov 32   ;;  %s229_s21 = smov 2  }
  0x13   :  { %30 = dma.hbm_to_vmem [thread:$0]  %s280_s0, 32, %s25_s10, [#allocation3], %s228_s20, %s228_s20, %s229_s21  }
  0x14   :  { %223 = dma.done.wait [#allocation3], 128  }
  0x15   :  { %224 = vsyncadd [#allocation3], 4294967168  ;;  %vm88_vm0 = vcmask 0   ;;  %v230_v0 = vmov 0.0   ;;  %v231_v1 = vmov 0   ;;  %v232_v2 = vmov 2  }
  0x16   :  { %89 = vst.msk [vmem:[#allocation5] sm:$0x1] %vm88_vm0, %v230_v0  ;;  %172 = vset.pattern.permute.xlu0 %v231_v1  ;;  %174 = vset.pattern.permute.xlu1 %v232_v2  ;;  %v97_v3 = vld [vmem:[%s281_s1] sm:$0xff]  ;;  %v233_v4 = vmov 1   ;;  %v234_v5 = vmov 3   ;;  %v92_v6 = vlaneseq  ;;  %s235_s0 = smov [#allocation5]  }
  0x17   :  { %99 = vperm.xlu0 %172, %v97_v3   ;;  %108 = vperm.xlu1 %174, %v97_v3   ;;  %v96_v13 = vld [vmem:[#allocation2] sm:$0xff]  ;;  %s146_s1 = sshll.u32 %s235_s0, 4  ;;  %s147_s1 = int_to_ptr.vmem [resolvable:$true] %s146_s1 }
  0x18   :  { %v93_v9 = vand.u32 127, %v92_v6  ;;  %v95_v10 = vshrl.u32 %v92_v6, 7  ;;  %s201_s26 = scalar_lea.vmem %s147_s1, 16  ;;  %s205_s27 = scalar_lea.vmem %s147_s1, 32 }
  0x19   :  { %p202_p8 = scmp.ne.s32.totalorder %s147_s1, %s201_s26  ;;  %p206_p9 = scmp.lt.s32.totalorder %s147_s1, %s147_s1 }
  0x1a   :  { %vm120_vm6 = vcmp.lt.s32.totalorder %v95_v10, 2  ;;  %p207_p10 = scmp.lt.s32.totalorder %s205_s27, %s201_s26 }
  0x1b   :  { %173 = vset.pattern.permute.xlu0 %v233_v4  ;;  %175 = vset.pattern.permute.xlu1 %v234_v5 }
  0x1c   :  { %103 = vperm.xlu0 %173, %v97_v3   ;;  %113 = vperm.xlu1 %175, %v97_v3   ;;  %p208_p11 = por %p207_p10, %p206_p9 }
  0x1d   :  { %v135_v24 = vld [vmem:[#allocation5] sm:$0x1] }
  0x1e   :  { %p209_p12 = pnand %p208_p11, %p202_p8 }
  0x20   :  { %176 = vset.pattern.permute.xlu0 %v234_v5 }
  0x96   :  { %v100_v7 = vpop.permute.xlu0 %99  ;;  %v109_v8 = vpop.permute.xlu1 %108 }
  0x97   :  { %vm101_vm1 = vcmp.eq.s32.totalorder %v93_v9, %v100_v7  ;;  %vm110_vm4 = vcmp.eq.s32.totalorder %v93_v9, %v109_v8 }
  0x9b   :  { %v104_v11 = vpop.permute.xlu0 %103  ;;  %v114_v12 = vpop.permute.xlu1 %113 }
  0x9c   :  { %vm105_vm2 = vcmp.eq.s32.totalorder %v93_v9, %v104_v11  ;;  %vm115_vm3 = vcmp.eq.s32.totalorder %v93_v9, %v114_v12 }
  0x9d   :  { %vm106_vm5 = vmor %vm101_vm1, %vm105_vm2 }
  0x9e   :  { %vm111_vm7 = vmor %vm106_vm5, %vm110_vm4 }
  0x9f   :  { %vm116_vm8 = vmor %vm111_vm7, %vm115_vm3 }
  0xa0   :  { %vm123_vm9 = vmand %vm116_vm8, %vm120_vm6 }
  0xa1   :  { %v124_v14 = vsel %vm123_vm9, %v96_v13, 1.0 }
  0xa2   :  { %177 = vlog2.f32 %v124_v14 }
  0xac   :  { %v178_v15 = vpop.eup %177 }
  0xad   :  { %v126_v16 = vmul.f32 0.6931472, %v178_v15 }
  0xaf   :  { %127 = vadd.xlane.f32.xlu1 %v126_v16 }
 0x13c   :  { %v128_v17 = vpop.xlane.xlu1 %127 }
 0x13d   :  { %v129_v18 = vrot.slane %v128_v17, 4 }
 0x13f   :  { %v130_v19 = vadd.f32 %v129_v18, %v128_v17 }
 0x141   :  { %v131_v20 = vrot.slane %v130_v19, 2 }
 0x143   :  { %v132_v21 = vadd.f32 %v131_v20, %v130_v19 }
 0x145   :  { %v133_v22 = vrot.slane %v132_v21, 1 }
 0x147   :  { %v134_v23 = vadd.f32 %v133_v22, %v132_v21 }
 0x149   :  { %v136_v25 = vsub.f32 0.0, %v134_v23 }
 0x14b   :  { %v137_v26 = vadd.f32 %v136_v25, %v135_v24 }
 0x14d   :  { %139 = vst.msk [vmem:[#allocation5] sm:$0x1] %vm88_vm0, %v137_v26 }
 0x14e   :  { %212 = shalt.err (!%p209_p12)
}
 0x14f   :  { %s213_s30 = scalar_lea.hbm %s282_s2, 16 }
 0x150   :  { %p214_p13 = scmp.ne.s32.totalorder %s282_s2, %s213_s30  ;;  %p217_p0 = scmp.lt.u32.totalorder %s213_s30, %s282_s2 }
 0x152   :  { %p219_p1 = pnand %p217_p0, %p214_p13 }
 0x154   :  { %222 = shalt.err (!%p219_p1)
}
 0x155   :  { %149 = dma.vmem_to_hbm [thread:$0]  %s147_s1, 16, %s282_s2, [#allocation4]  }
 0x156   :  { %225 = dma.done.wait [#allocation4], 16  }
 0x157   :  { %226 = vsyncadd [#allocation4], 4294967280 }
 0x158   :  { %153 = vsyncpa [#allocation3], 1 }
 0x159   :  { %154 = vsyncpa [#allocation4], 1 }

</bundles_post_ra>
